<compile_context>
chip_gen: v7x
topology: tpu7x:2x2x1
jax: 0.10.0
libtpu: 0.0.40
codegen_flags: <defaults>
</compile_context>

<pallas_src>
import functools

import jax
import jax.numpy as jnp
from jax import lax
from jax.experimental import pallas as pl
from jax.experimental.pallas import tpu as pltpu

ALPHA = 0.5
CE_RATIO = 0.5

LANES = 128
NC = 2                     # leading grid axis: one accumulator row per TensorCore
MAX_BLOCK_ROWS = 8192      # (8192, 128) f32 = 4 MiB per input per pipeline buffer
STRIP_ROWS = 512           # inner strip height: bounds Mosaic's live temporaries
ROW_MULT = 16              # legal sublane multiple for both f32 and bf16 blocks
VMEM_LIMIT_BYTES = 40 * 1024 * 1024


def _round_up(x, m):
    return -(-x // m) * m


def _choose_block_rows(rows):
    """Largest useful block: a multiple of STRIP_ROWS capped at MAX_BLOCK_ROWS
    for big inputs, or the whole per-core share (rounded to ROW_MULT) for small
    ones.  No exact-divisor search: the ragged tail block is masked in-kernel."""
    per_core = -(-rows // NC)
    if per_core >= STRIP_ROWS:
        return min(MAX_BLOCK_ROWS, _round_up(per_core, STRIP_ROWS))
    return _round_up(per_core, ROW_MULT)


def _combo_partials_kernel(x_ref, t_ref, o_ref, acc_ref, *, blocks_per_core,
                           block_rows, strip_rows, rows, eps, binary_targets):
    """Fold this core's row range into per-lane partial sums of intersection
    (x*t), inputs+targets (x+t) and the weighted cross-entropy."""
    c = pl.program_id(0)
    j = pl.program_id(1)

    @pl.when(j == 0)
    def _():
        acc_ref[...] = jnp.zeros_like(acc_ref)

    step = c * blocks_per_core + j          # linear block index over the array
    full_blocks = rows // block_rows        # static: # of completely valid blocks
    rem_rows = rows % block_rows            # static: valid rows in the tail block
    n_strips = block_rows // strip_rows     # static

    c1n = jnp.float32(-ALPHA)               # outer negation folded into constants
    c2n = jnp.float32(-ALPHA * (1.0 - ALPHA))

    def strip_sums(x, t, row_mask=None):
        x = x.astype(jnp.float32)
        t = t.astype(jnp.float32)
        if row_mask is not None:            # only the single ragged tail strip
            x = jnp.where(row_mask, x, 0.0)
            t = jnp.where(row_mask, t, 0.0)
        xc = jnp.clip(x, eps, 1.0 - eps)
        if binary_targets:
            # Single-log fast path, valid only for exact {0,1} targets.
            pos = t > 0.5
            ce = jnp.where(pos, c1n, c2n) * jnp.log(jnp.where(pos, xc, 1.0 - xc))
        else:
            # -(a*t*log(xc) + a*(1-a)*(1-t)*log(1-xc)) == t*(c1n*lp - m2) + m2
            m2 = c2n * jnp.log(1.0 - xc)
            ce = t * (c1n * jnp.log(xc) - m2) + m2
        if row_mask is not None:
            ce = jnp.where(row_mask, ce, 0.0)
        return (jnp.sum(x * t, axis=0, keepdims=True),
                jnp.sum(x + t, axis=0, keepdims=True),
                jnp.sum(ce, axis=0, keepdims=True))

    def strip_body(s, carry):
        a_xt, a_s, a_ce = carry
        r0 = pl.multiple_of(s * strip_rows, ROW_MULT)
        sxt, sst, sce = strip_sums(x_ref[pl.ds(r0, strip_rows), :],
                                   t_ref[pl.ds(r0, strip_rows), :])
        return a_xt + sxt, a_s + sst, a_ce + sce

    def flush(a_xt, a_s, a_ce):
        acc_ref[0:1, :] += a_xt
        acc_ref[1:2, :] += a_s
        acc_ref[2:3, :] += a_ce

    zeros3 = (jnp.zeros((1, LANES), jnp.float32),) * 3

    @pl.when(step < full_blocks)            # fully valid block: no masking at all
    def _():
        flush(*lax.fori_loop(0, n_strips, strip_body, zeros3, unroll=True))

    if rem_rows:                            # static: a ragged tail block exists
        tail_full_strips = rem_rows // strip_rows     # static
        tail_in_strip = rem_rows % strip_rows         # static

        @pl.when(step == full_blocks)
        def _():
            if tail_full_strips:
                a_xt, a_s, a_ce = lax.fori_loop(0, tail_full_strips, strip_body,
                                                zeros3, unroll=True)
            else:
                a_xt, a_s, a_ce = zeros3
            if tail_in_strip:
                r0 = tail_full_strips * strip_rows    # static offset
                row_mask = (lax.broadcasted_iota(jnp.int32, (strip_rows, 1), 0)
                            < tail_in_strip)          # compile-time-constant mask
                sxt, sst, sce = strip_sums(x_ref[pl.ds(r0, strip_rows), :],
                                           t_ref[pl.ds(r0, strip_rows), :],
                                           row_mask=row_mask)
                a_xt, a_s, a_ce = a_xt + sxt, a_s + sst, a_ce + sce
            flush(a_xt, a_s, a_ce)

    @pl.when(j == pl.num_programs(1) - 1)
    def _():
        o_ref[0, :, :] = acc_ref[...]


def combo_loss(inputs, targets, smooth=1.0, eps=1e-9, binary_targets=False):
    """JAX/Pallas equivalent of ComboLoss.forward."""
    x = inputs.reshape(-1)
    t = targets.reshape(-1)
    n = x.shape[0]

    rows = max(-(-n // LANES), ROW_MULT)    # at least one legal (16, 128) block
    n_alloc = rows * LANES
    if n_alloc != n:
        # Only when n is not a multiple of 128 (or the input is tiny); large
        # lane-aligned tensors stream from HBM in place (in-kernel tail masking).
        x = jnp.pad(x, (0, n_alloc - n))
        t = jnp.pad(t, (0, n_alloc - n))
    x2 = x.reshape(rows, LANES)
    t2 = t.reshape(rows, LANES)

    block_rows = _choose_block_rows(rows)
    strip_rows = min(STRIP_ROWS, block_rows)
    nb = -(-rows // block_rows)             # number of real row-blocks
    blocks_per_core = -(-nb // NC)

    kernel = functools.partial(
        _combo_partials_kernel,
        blocks_per_core=blocks_per_core, block_rows=block_rows,
        strip_rows=strip_rows, rows=rows, eps=float(eps),
        binary_targets=binary_targets)

    def in_map(c, j):
        # Clamp grid steps past the last real block (possible when nb % NC != 0);
        # their redundant re-read of the final block is statically skipped.
        return (jnp.minimum(c * blocks_per_core + j, nb - 1), 0)

    parts = pl.pallas_call(
        kernel,
        out_shape=jax.ShapeDtypeStruct((NC, 3, LANES), jnp.float32),
        grid_spec=pltpu.PrefetchScalarGridSpec(
            num_scalar_prefetch=0,
            grid=(NC, blocks_per_core),
            in_specs=[
                pl.BlockSpec((block_rows, LANES), in_map),
                pl.BlockSpec((block_rows, LANES), in_map),
            ],
            out_specs=pl.BlockSpec((1, 3, LANES), lambda c, j: (c, 0, 0)),
            scratch_shapes=[pltpu.VMEM((3, LANES), jnp.float32)],
        ),
        compiler_params=pltpu.CompilerParams(
            # TODO(synk): confirm the leading axis really splits across both
            # TensorCores on v7x; if not, switch it to pltpu.CORE_PARALLEL.
            dimension_semantics=("parallel", "arbitrary"),
            vmem_limit_bytes=VMEM_LIMIT_BYTES),
    )(x2, t2)

    sums = jnp.sum(parts, axis=(0, 2))      # (3,) scalar totals
    intersection, sum_in_tgt, ce_sum = sums[0], sums[1], sums[2]

    n_pad = n_alloc - n
    if n_pad:
        # Each zero-padded element (x = t = 0) adds
        # -ALPHA*(1-ALPHA)*log(1 - clip(0, eps, 1-eps)) to the CE sum; remove it
        # analytically (exactly 0.0 for the default eps = 1e-9 in float32).
        eps32 = jnp.float32(eps)
        xc0 = jnp.clip(jnp.float32(0.0), eps32, jnp.float32(1.0) - eps32)
        pad_ce = jnp.float32(n_pad) * (jnp.float32(-ALPHA * (1.0 - ALPHA))
                                       * jnp.log(jnp.float32(1.0) - xc0))
        ce_sum = ce_sum - pad_ce

    dice = (2.0 * intersection + smooth) / (sum_in_tgt + smooth)
    weighted_ce = ce_sum / jnp.float32(n)
    return CE_RATIO * weighted_ce - (1.0 - CE_RATIO) * dice


def combo_loss_ref(inputs, targets, smooth=1.0, eps=1e-9):
    x = inputs.reshape(-1).astype(jnp.float32)
    t = targets.reshape(-1).astype(jnp.float32)
    intersection = jnp.sum(x * t)
    dice = (2.0 * intersection + smooth) / (jnp.sum(x) + jnp.sum(t) + smooth)
    xc = jnp.clip(x, eps, 1.0 - eps)
    out = -(ALPHA * (t * jnp.log(xc)
                     + (1.0 - ALPHA) * (1.0 - t) * jnp.log(1.0 - xc)))
    weighted_ce = jnp.mean(out)
    return CE_RATIO * weighted_ce - (1.0 - CE_RATIO) * dice


if __name__ == "__main__":
    key = jax.random.PRNGKey(0)

    def make_case(k, shape):
        k1, k2 = jax.random.split(k)
        inputs = jax.nn.sigmoid(jax.random.normal(k1, shape, jnp.float32))
        targets = (jax.random.uniform(k2, shape) > 0.5).astype(jnp.float32)
        return inputs, targets

    shapes = [
        (2, 4, 16, 16),     # 2048 elems   -> one tiny block, second core idle
        (2, 1, 64, 64),     # 8192 elems   -> one full block per core, no masking
        (1, 1, 10, 10),     # 100 elems    -> ragged (not a multiple of 128)
        (4, 3, 130, 130),   # 202800 elems -> multi-strip blocks + masked tail strip
    ]
    keys = jax.random.split(key, len(shapes))
    for idx, (k, shape) in enumerate(zip(keys, shapes)):
        inputs, targets = make_case(k, shape)
        ref = combo_loss_ref(inputs, targets)
        loss = jax.block_until_ready(combo_loss(inputs, targets))
        assert jnp.allclose(loss, ref, rtol=1e-5, atol=2e-6), (shape, loss, ref)
        if idx == 0:
            # Optional single-log fast path (targets here are exact {0,1} masks).
            loss_bin = jax.block_until_ready(
                combo_loss(inputs, targets, binary_targets=True))
            assert jnp.allclose(loss_bin, ref, rtol=1e-5, atol=2e-6), (
                shape, loss_bin, ref)

    print("KERNEL_OK")
</pallas_src>

<mosaic_0001>
module attributes {stable_mosaic.version = 11 : i64} {
  func.func @_combo_partials_kernel(%arg0: i32, %arg1: i32, %arg2: memref<16x128xf32, #tpu.memory_space<vmem>>, %arg3: memref<16x128xf32, #tpu.memory_space<vmem>>, %arg4: memref<1x3x128xf32, #tpu.memory_space<vmem>>, %arg5: memref<3x128xf32, #tpu.memory_space<vmem>>) attributes {dimension_semantics = [#tpu.dimension_semantics<parallel>, #tpu.dimension_semantics<arbitrary>], iteration_bounds = array<i64: 2, 1>, scalar_prefetch = 0 : i64, scratch_operands = 1 : i64, tpu.core_type = #tpu.core_type<tc>, window_params = [{transform_indices = @transform_0, window_bounds = array<i64: 16, 128>}, {transform_indices = @transform_1, window_bounds = array<i64: 16, 128>}, {transform_indices = @transform_2, window_bounds = array<i64: 1, 3, 128>}]} {
    %c0_i32 = arith.constant 0 : i32
    %0 = arith.cmpi eq, %arg1, %c0_i32 : i32
    %1 = arith.extui %0 : i1 to i32
    %c0_i32_0 = arith.constant 0 : i32
    %2 = arith.cmpi ne, %1, %c0_i32_0 : i32
    scf.if %2 {
      %cst_7 = arith.constant 0.000000e+00 : f32
      %12 = vector.broadcast %cst_7 : f32 to vector<3x128xf32>
      %c0 = arith.constant 0 : index
      %c0_8 = arith.constant 0 : index
      %13 = vector.load %arg5[%c0, %c0_8] : memref<3x128xf32, #tpu.memory_space<vmem>>, vector<3x128xf32>
      tpu.vector_store %arg5[%c0, %c0_8], %12 {strides = array<i32>} : memref<3x128xf32, #tpu.memory_space<vmem>>, vector<3x128xf32>,
    } else {
    }
    %c1_i32 = arith.constant 1 : i32
    %3 = arith.muli %arg0, %c1_i32 : i32
    %4 = arith.addi %3, %arg1 : i32
    %cst = arith.constant 0.000000e+00 : f32
    %5 = vector.broadcast %cst : f32 to vector<1x128xf32>
    %c1_i32_1 = arith.constant 1 : i32
    %6 = arith.cmpi slt, %4, %c1_i32_1 : i32
    %7 = arith.extui %6 : i1 to i32
    %cst_2 = arith.constant -2.500000e-01 : f32
    %cst_3 = arith.constant -5.000000e-01 : f32
    %c0_i32_4 = arith.constant 0 : i32
    %8 = arith.cmpi ne, %7, %c0_i32_4 : i32
    scf.if %8 {
      %c0_i32_7 = arith.constant 0 : i32
      %c16_i32 = arith.constant 16 : i32
      %12 = arith.muli %c0_i32_7, %c16_i32 : i32
      %13 = tpu.assume_multiple %12, 16 : i32
      %14 = arith.index_cast %13 : i32 to index
      %c0 = arith.constant 0 : index
      %15 = vector.load %arg2[%14, %c0] : memref<16x128xf32, #tpu.memory_space<vmem>>, vector<16x128xf32>
      %16 = arith.index_cast %13 : i32 to index
      %c0_8 = arith.constant 0 : index
      %17 = vector.load %arg3[%16, %c0_8] : memref<16x128xf32, #tpu.memory_space<vmem>>, vector<16x128xf32>
      %cst_9 = arith.constant 9.99999971E-10 : f32
      %cst_10 = arith.constant 1.000000e+00 : f32
      %18 = vector.broadcast %cst_9 : f32 to vector<16x128xf32>
      %19 = arith.maximumf %18, %15 : vector<16x128xf32>
      %20 = vector.broadcast %cst_10 : f32 to vector<16x128xf32>
      %21 = arith.minimumf %20, %19 : vector<16x128xf32>
      %cst_11 = arith.constant 1.000000e+00 : f32
      %22 = vector.broadcast %cst_11 : f32 to vector<16x128xf32>
      %23 = arith.subf %22, %21 : vector<16x128xf32>
      %24 = math.log %23 : vector<16x128xf32>
      %25 = vector.broadcast %cst_2 : f32 to vector<16x128xf32>
      %26 = arith.mulf %25, %24 : vector<16x128xf32>
      %27 = math.log %21 : vector<16x128xf32>
      %28 = vector.broadcast %cst_3 : f32 to vector<16x128xf32>
      %29 = arith.mulf %28, %27 : vector<16x128xf32>
      %30 = arith.subf %29, %26 : vector<16x128xf32>
      %31 = arith.mulf %17, %30 : vector<16x128xf32>
      %32 = arith.addf %31, %26 : vector<16x128xf32>
      %33 = arith.mulf %15, %17 : vector<16x128xf32>
      %cst_12 = arith.constant dense<0.000000e+00> : vector<128xf32>
      %34 = vector.multi_reduction <add>, %33, %cst_12 [0] : vector<16x128xf32> to vector<128xf32>
      %35 = vector.shape_cast %34 : vector<128xf32> to vector<1x128xf32>
      %36 = arith.addf %15, %17 : vector<16x128xf32>
      %cst_13 = arith.constant dense<0.000000e+00> : vector<128xf32>
      %37 = vector.multi_reduction <add>, %36, %cst_13 [0] : vector<16x128xf32> to vector<128xf32>
      %38 = vector.shape_cast %37 : vector<128xf32> to vector<1x128xf32>
      %cst_14 = arith.constant dense<0.000000e+00> : vector<128xf32>
      %39 = vector.multi_reduction <add>, %32, %cst_14 [0] : vector<16x128xf32> to vector<128xf32>
      %40 = vector.shape_cast %39 : vector<128xf32> to vector<1x128xf32>
      %41 = arith.addf %5, %35 : vector<1x128xf32>
      %42 = arith.addf %5, %38 : vector<1x128xf32>
      %43 = arith.addf %5, %40 : vector<1x128xf32>
      %c1_i32_15 = arith.constant 1 : i32
      %c0_16 = arith.constant 0 : index
      %c0_17 = arith.constant 0 : index
      %44 = vector.load %arg5[%c0_16, %c0_17] : memref<3x128xf32, #tpu.memory_space<vmem>>, vector<1x128xf32>
      %45 = arith.addf %44, %41 : vector<1x128xf32>
      %c0_18 = arith.constant 0 : index
      %c0_19 = arith.constant 0 : index
      %46 = vector.load %arg5[%c0_18, %c0_19] : memref<3x128xf32, #tpu.memory_space<vmem>>, vector<1x128xf32>
      tpu.vector_store %arg5[%c0_18, %c0_19], %45 {strides = array<i32>} : memref<3x128xf32, #tpu.memory_space<vmem>>, vector<1x128xf32>,
      %c1 = arith.constant 1 : index
      %c0_20 = arith.constant 0 : index
      %47 = vector.load %arg5[%c1, %c0_20] : memref<3x128xf32, #tpu.memory_space<vmem>>, vector<1x128xf32>
      %48 = arith.addf %47, %42 : vector<1x128xf32>
      %c1_21 = arith.constant 1 : index
      %c0_22 = arith.constant 0 : index
      %49 = vector.load %arg5[%c1_21, %c0_22] : memref<3x128xf32, #tpu.memory_space<vmem>>, vector<1x128xf32>
      tpu.vector_store %arg5[%c1_21, %c0_22], %48 {strides = array<i32>} : memref<3x128xf32, #tpu.memory_space<vmem>>, vector<1x128xf32>,
      %c2 = arith.constant 2 : index
      %c0_23 = arith.constant 0 : index
      %50 = vector.load %arg5[%c2, %c0_23] : memref<3x128xf32, #tpu.memory_space<vmem>>, vector<1x128xf32>
      %51 = arith.addf %50, %43 : vector<1x128xf32>
      %c2_24 = arith.constant 2 : index
      %c0_25 = arith.constant 0 : index
      %52 = vector.load %arg5[%c2_24, %c0_25] : memref<3x128xf32, #tpu.memory_space<vmem>>, vector<1x128xf32>
      tpu.vector_store %arg5[%c2_24, %c0_25], %51 {strides = array<i32>} : memref<3x128xf32, #tpu.memory_space<vmem>>, vector<1x128xf32>,
    } else {
    }
    %c0_i32_5 = arith.constant 0 : i32
    %9 = arith.cmpi eq, %arg1, %c0_i32_5 : i32
    %10 = arith.extui %9 : i1 to i32
    %c0_i32_6 = arith.constant 0 : i32
    %11 = arith.cmpi ne, %10, %c0_i32_6 : i32
    scf.if %11 {
      %c0 = arith.constant 0 : index
      %c0_7 = arith.constant 0 : index
      %12 = vector.load %arg5[%c0, %c0_7] : memref<3x128xf32, #tpu.memory_space<vmem>>, vector<3x128xf32>
      %c0_8 = arith.constant 0 : index
      %c0_9 = arith.constant 0 : index
      %c0_10 = arith.constant 0 : index
      %13 = vector.load %arg4[%c0_8, %c0_9, %c0_10] : memref<1x3x128xf32, #tpu.memory_space<vmem>>, vector<1x3x128xf32>
      %14 = vector.shape_cast %13 : vector<1x3x128xf32> to vector<3x128xf32>
      %15 = vector.shape_cast %12 : vector<3x128xf32> to vector<1x3x128xf32>
      tpu.vector_store %arg4[%c0_8, %c0_9, %c0_10], %15 {strides = array<i32>} : memref<1x3x128xf32, #tpu.memory_space<vmem>>, vector<1x3x128xf32>,
    } else {
    }
    return
  }
  func.func @transform_0(%arg0: i32, %arg1: i32) -> (i32, i32) {
    %c1_i32 = arith.constant 1 : i32
    %0 = arith.muli %arg0, %c1_i32 : i32
    %1 = arith.addi %0, %arg1 : i32
    %c0_i32 = arith.constant 0 : i32
    %2 = arith.minsi %1, %c0_i32 : i32
    %c0_i32_0 = arith.constant 0 : i32
    %c0_i32_1 = arith.constant 0 : i32
    return %2, %c0_i32_0 : i32, i32
  }
  func.func @transform_1(%arg0: i32, %arg1: i32) -> (i32, i32) {
    %c1_i32 = arith.constant 1 : i32
    %0 = arith.muli %arg0, %c1_i32 : i32
    %1 = arith.addi %0, %arg1 : i32
    %c0_i32 = arith.constant 0 : i32
    %2 = arith.minsi %1, %c0_i32 : i32
    %c0_i32_0 = arith.constant 0 : i32
    %c0_i32_1 = arith.constant 0 : i32
    return %2, %c0_i32_0 : i32, i32
  }
  func.func @transform_2(%arg0: i32, %arg1: i32) -> (i32, i32, i32) {
    %c0_i32 = arith.constant 0 : i32
    %c0_i32_0 = arith.constant 0 : i32
    %c0_i32_1 = arith.constant 0 : i32
    return %arg0, %c0_i32, %c0_i32_0 : i32, i32, i32
  }
}

</mosaic_0001>

<bundles_post_ra>
// kernel: tpu_custom_call.1
= control target key start
LH: loop header
LB: loop body
LE: loop exit
PB: predicated region body
PF: predicated region fallthrough
CT: control target
= control target key end

     0   :  { %7 = vsyncpa [#allocation4], 0  ;;  %s766_s0 = inlined_call_operand.hbm [shape: f32[16,128], index: 0, kind: input, shape index: {}]   ;;  %s767_s1 = inlined_call_operand.hbm [shape: f32[16,128], index: 1, kind: input, shape index: {}]   ;;  %s768_s2 = inlined_call_operand.vmem [shape: f32[2,3,128], index: 2, kind: output, shape index: {}]  }
   0x1   :  { %9 = vsyncpa [#allocation4 + $0x1], 0 }
   0x2   :  { %10 = vsyncpa [#allocation6], 0 }
   0x3   :  { %12 = vsyncpa [#allocation6 + $0x1], 0  ;;  %s639_s9 = smov 0   ;;  %s641_s10 = smov 0  }
   0x4   :  { %s643_s11 = smov 0   ;;  %s645_s12 = smov 0  }
   0x5   :  { %s647_s13 = smov 0  }
   0x6 LB: > { %s416_s14 = sadd.s32 4294967295, %s617_s13   ;;  %s30_s15 = sadd.s32 1, %s613_s12  ;;  %s617_s13 = sphi %s647_s13, %s18_s13   ;;  %s613_s12 = sphi %s645_s12, %s777_s12   ;;  %s609_s11 = sphi %s643_s11, %s776_s11   ;;  %s605_s10 = sphi %s641_s10, %s756_s10   ;;  %s601_s9 = sphi %s639_s9, %s775_s9  }
   0x7   : > { %p32_p0 = scmp.ge.s32.totalorder %s30_s15, 2  ;;  %p598_p1 = scmp.ne.s32.totalorder %s605_s10, 0 }
   0x8   : > { %p51_p2 = scmp.eq.s32.totalorder %s617_s13, 0  ;;  %p56_p3 = scmp.ne.s32.totalorder %s605_s10, %s601_s9 }
   0x9   : > { %s779_s15 = smov (%p32_p0, %s30_s15), 0  ;;  %p57_p4 = scmp.eq.s32.totalorder %s416_s14, 0 }
   0xa   : > { %p52_p5 = por %p598_p1, %p51_p2  ;;  %p446_p7 = scmp.lt.s32.totalorder %s617_s13, 2 }
   0xb   : > { %p669_p6 = por %p57_p4, %p56_p3  ;;  %s619_s17 = smov [#allocation3]  }
   0xc   : > { %s152_s18 = sshll.u32 %s619_s17, 4  ;;  %p674_p8 = pnand %p446_p7, %p52_p5  ;;  %s153_s18 = int_to_ptr.vmem [resolvable:$true] %s152_s18 }
   0xd   : > { %s770_s16 = scalar_select %p669_p6, 1, 0 }
   0xe   : > { %s506_s22 = scalar_lea.hbm %s766_s0, 256  ;;  %p508_p10 = pneg %p674_p8 }
   0xf   : > { %p507_p9 = scmp.ne.s32.totalorder %s766_s0, %s506_s22  ;;  %p513_p13 = scmp.lt.u32.totalorder %s506_s22, %s506_s22 }
  0x10   : > { %p515_p0 = scmp.lt.u32.totalorder %s506_s22, %s766_s0 }
  0x11   : > { %p509_p11 = pnand %p508_p10, %p507_p9 }
  0x12   : > { %p516_p1 = por %p515_p0, %p513_p13 }
  0x13   : > { %p510_p12 = pneg %p509_p11 }
  0x15   : > { %p517_p2 = pnand %p516_p1, %p510_p12 }
  0x17   : > { %520 = shalt.err (!%p517_p2)
}
  0x18   : > { %s521_s27 = scalar_lea.vmem %s153_s18, 256  ;;  %s528_s28 = scalar_lea.vmem %s153_s18, 512 }
  0x19   : > { %p522_p3 = scmp.ne.s32.totalorder %s153_s18, %s521_s27  ;;  %p529_p7 = scmp.lt.s32.totalorder %s153_s18, %s153_s18 }
  0x1a   : > { %p530_p6 = scmp.lt.s32.totalorder %s528_s28, %s521_s27 }
  0x1b   : > { %p524_p4 = pnand %p522_p3, %p508_p10 }
  0x1c   : > { %p531_p9 = por %p530_p6, %p529_p7 }
  0x1d   : > { %p525_p5 = pneg %p524_p4 }
  0x1f   : > { %p532_p11 = pnand %p531_p9, %p525_p5 }
  0x21   : > { %535 = shalt.err (!%p532_p11)
}
  0x22   : > { %s620_s29 = smov 128   ;;  %s621_s30 = smov 8  }
  0x23   : > { %442 = dma.hbm_to_vmem [thread:$0]  (!%p674_p8), %s766_s0, 256, %s153_s18, [#allocation4], %s620_s29, %s620_s29, %s621_s30  }
  0x24   : > { %p426_p12 = scmp.ge.s32.totalorder %s617_s13, 1  ;;  %p184_p13 = scmp.lt.s32.totalorder %s617_s13, 3 }
  0x25   : > { %s622_s6 = smov [#allocation5]   ;;  %s536_s14 = scalar_lea.hbm %s767_s1, 256 }
  0x26   : > { %p705_p0 = pnand %p426_p12, %p184_p13  ;;  %s176_s7 = sshll.u32 %s622_s6, 4  ;;  %s177_s7 = int_to_ptr.vmem [resolvable:$true] %s176_s7 }
  0x27   : > { %p537_p6 = scmp.ne.s32.totalorder %s767_s1, %s536_s14  ;;  %p543_p3 = scmp.lt.u32.totalorder %s536_s14, %s536_s14 }
  0x28   : > { %s772_s5 = scalar_select %p705_p0, 1, 0 }
  0x29   : > { %p539_p1 = pnand %p537_p6, %p508_p10  ;;  %p545_p4 = scmp.lt.u32.totalorder %s536_s14, %s767_s1 }
  0x2b   : > { %p540_p2 = pneg %p539_p1  ;;  %p546_p5 = por %p545_p4, %p543_p3 }
  0x2d   : > { %p547_p7 = pnand %p546_p5, %p540_p2 }
  0x2f   : > { %550 = shalt.err (!%p547_p7)
}
  0x30   : > { %s551_s22 = scalar_lea.vmem %s177_s7, 256  ;;  %s558_s23 = scalar_lea.vmem %s177_s7, 512 }
  0x31   : > { %p552_p9 = scmp.ne.s32.totalorder %s177_s7, %s551_s22  ;;  %p559_p13 = scmp.lt.s32.totalorder %s177_s7, %s177_s7 }
  0x32   : > { %p560_p0 = scmp.lt.s32.totalorder %s558_s23, %s551_s22 }
  0x33   : > { %p554_p11 = pnand %p552_p9, %p508_p10 }
  0x34   : > { %p561_p6 = por %p560_p0, %p559_p13 }
  0x35   : > { %p555_p12 = pneg %p554_p11 }
  0x37   : > { %p562_p1 = pnand %p561_p6, %p555_p12 }
  0x39   : > { %565 = shalt.err (!%p562_p1)
}
  0x3a   : > { %445 = dma.hbm_to_vmem [thread:$0]  (!%p674_p8), %s767_s1, 256, %s177_s7, [#allocation6], %s620_s29, %s620_s29, %s621_s30  }
  0x3b   : > { %p773_p2 = scmp.ne.s32.totalorder %s772_s5, 0 }
  0x3c   : > { %s190_s26 = sand.u32 (!%p773_p2), 1, %s605_s10   ;;  %p774_p10 = scmp.ne.s32.totalorder (!%p773_p2), %s770_s16, 0 }
  0x3d   : > { %188 = sbr.rel (%p773_p2) target bundleno = 127 (0x7f), region = 28  ;;  %s427_s27 = sshll.u32 (!%p773_p2), %s190_s26, 4 }
  0x3e   : > { %s191_s28 = scalar_lea.sflag (!%p773_p2), [#allocation4], %s190_s26  ;;  %s194_s3 = scalar_lea.vmem (!%p773_p2), [#allocation3], %s427_s27 }
  0x44   : > { %591 = dma.done.wait (%p774_p10), %s191_s28, 256  }
  0x45   : > { %593 = vsyncadd (%p774_p10), %s191_s28, 4294967040  ;;  %s200_s19 = scalar_lea.sflag [#allocation6], %s190_s26  ;;  %s203_s4 = scalar_lea.vmem [#allocation5], %s427_s27 }
  0x46   : > { %595 = dma.done.wait (%p774_p10), %s200_s19, 256  }
  0x47   : > { %597 = vsyncadd (%p774_p10), %s200_s19, 4294967040  ;;  %p236_p8 = scmp.lt.s32.totalorder %s609_s11, 1  ;;  %v623_v0 = vmov 0.0   ;;  %p430_p0 = scmp.ge.s32.totalorder %s609_s11, 1 }
  0x48   : > { %244 = vst [vmem:[#allocation2] sm:$0x7] %v623_v0  ;;  %v250_v1 = vld [vmem:[%s194_s3] sm:$0xff] (!%p430_p0)  ;;  %v251_v2 = vld [vmem:[%s194_s3 + $0x8] sm:$0xff] (!%p430_p0) }
  0x49   : > { %s237_s29 = scalar_select %p236_p8, %s609_s11, 1 }
  0x4a   : > { %249 = sbr.rel (%p430_p0) target bundleno = 119 (0x77), region = 44  ;;  %v252_v3 = vld [vmem:[%s203_s4] sm:$0xff] (!%p430_p0)  ;;  %v253_v4 = vld [vmem:[%s203_s4 + $0x8] sm:$0xff] (!%p430_p0)  ;;  %v254_v5 = vmax.f32 (!%p430_p0), %v250_v1, 1e-09 }
  0x4b   : > { %s429_s30 = sshll.u32 %s237_s29, 2  ;;  %v255_v6 = vmax.f32 (!%p430_p0), %v251_v2, 1e-09  ;;  %v278_v7 = vmul.f32 (!%p430_p0), %v252_v3, %v250_v1  ;;  %v287_v8 = vadd.f32 (!%p430_p0), %v252_v3, %v250_v1  ;;  %v279_v9 = vmul.f32 (!%p430_p0), %v253_v4, %v251_v2 }
  0x4c   : > { %s748_s7 = scalar_lea.vmem %s768_s2, %s429_s30  ;;  %v288_v10 = vadd.f32 (!%p430_p0), %v253_v4, %v251_v2  ;;  %v256_v11 = vmin.f32 (!%p430_p0), %v254_v5, 1.0 }
  0x4d   : > { %v257_v12 = vmin.f32 (!%p430_p0), %v255_v6, 1.0  ;;  %v280_v13 = vadd.f32 (!%p430_p0), %v279_v9, %v278_v7 }
  0x4e   : > { %v289_v14 = vadd.f32 (!%p430_p0), %v288_v10, %v287_v8  ;;  %498 = vlog2.f32 (!%p430_p0), %v256_v11  ;;  %v258_v15 = vsub.f32 (!%p430_p0), 1.0, %v256_v11 }
  0x4f   : > { %v259_v16 = vsub.f32 (!%p430_p0), 1.0, %v257_v12  ;;  %500 = vlog2.f32 (!%p430_p0), %v257_v12  ;;  %v281_v17 = vrot.slane (!%p430_p0), %v280_v13, 4  ;;  %v306_v28 = vld [vmem:[#allocation2] sm:$0x1] (!%p430_p0)  ;;  %v309_v29 = vld [vmem:[#allocation2 + $0x1] sm:$0x1] (!%p430_p0) }
  0x50   : > { %v290_v18 = vrot.slane (!%p430_p0), %v289_v14, 4  ;;  %502 = vlog2.f32 (!%p430_p0), %v258_v15  ;;  %v312_v57 = vld [vmem:[#allocation2 + $0x2] sm:$0x1] (!%p430_p0) }
  0x51   : > { %v282_v19 = vadd.f32 %v281_v17, %v280_v13  ;;  %504 = vlog2.f32 %v259_v16 }
  0x52   : > { %v291_v20 = vadd.f32 %v290_v18, %v289_v14 }
  0x53   : > { %v283_v21 = vrot.slane %v282_v19, 2 }
  0x54   : > { %v292_v22 = vrot.slane %v291_v20, 2 }
  0x55   : > { %v284_v23 = vadd.f32 %v283_v21, %v282_v19 }
  0x56   : > { %v293_v24 = vadd.f32 %v292_v22, %v291_v20 }
  0x57   : > { %v285_v25 = vrot.slane %v284_v23, 1 }
  0x58   : > { %v294_v26 = vrot.slane %v293_v24, 1  ;;  %v499_v27 = vpop.eup %498 }
  0x59   : > { %v501_v30 = vpop.eup %500  ;;  %v286_v31 = vadd.f32 %v285_v25, %v284_v23  ;;  %v267_v33 = vmul.f32 0.6931472, %v499_v27 }
  0x5a   : > { %v295_v32 = vadd.f32 %v294_v26, %v293_v24  ;;  %v503_v34 = vpop.eup %502  ;;  %v269_v35 = vmul.f32 0.6931472, %v501_v30 }
  0x5b   : > { %v505_v36 = vpop.eup %504  ;;  %v307_v37 = vadd.f32 %v306_v28, %v286_v31  ;;  %v261_v39 = vmul.f32 0.6931472, %v503_v34  ;;  %v270_v40 = vmul.f32 -0.5, %v267_v33 }
  0x5c   : > { %v310_v38 = vadd.f32 %v309_v29, %v295_v32  ;;  %v263_v41 = vmul.f32 0.6931472, %v505_v36  ;;  %v271_v42 = vmul.f32 -0.5, %v269_v35 }
  0x5d   : > { %308 = vst [vmem:[#allocation2] sm:$0x1] %v307_v37  ;;  %v264_v43 = vmul.f32 -0.25, %v261_v39 }
  0x5e   : > { %311 = vst [vmem:[#allocation2 + $0x1] sm:$0x1] %v310_v38  ;;  %v265_v44 = vmul.f32 -0.25, %v263_v41 }
  0x5f   : > { %v272_v45 = vsub.f32 %v270_v40, %v264_v43 }
  0x60   : > { %v273_v46 = vsub.f32 %v271_v42, %v265_v44 }
  0x61   : > { %v274_v47 = vmul.f32 %v272_v45, %v252_v3 }
  0x62   : > { %v275_v48 = vmul.f32 %v273_v46, %v253_v4 }
  0x63   : > { %v276_v49 = vadd.f32 %v274_v47, %v264_v43 }
  0x64   : > { %v277_v50 = vadd.f32 %v275_v48, %v265_v44 }
  0x66   : > { %v296_v51 = vadd.f32 %v277_v50, %v276_v49 }
  0x68   : > { %v297_v52 = vrot.slane %v296_v51, 4 }
  0x6a   : > { %v298_v53 = vadd.f32 %v297_v52, %v296_v51 }
  0x6c   : > { %v299_v54 = vrot.slane %v298_v53, 2 }
  0x6e   : > { %v300_v55 = vadd.f32 %v299_v54, %v298_v53 }
  0x70   : > { %v301_v56 = vrot.slane %v300_v55, 1 }
  0x72   : > { %v302_v58 = vadd.f32 %v301_v56, %v300_v55 }
  0x74   : > { %v313_v59 = vadd.f32 %v312_v57, %v302_v58 }
  0x76   : > { %314 = vst [vmem:[#allocation2 + $0x2] sm:$0x1] %v313_v59 }
  0x77 PF:  {}
  0x7d   : > { %v318_v60 = vld [vmem:[#allocation2] sm:$0x7] }
  0x7e   : > { %319 = vst [vmem:[%s748_s7] sm:$0x7] %v318_v60 }
  0x7f PF: > { %s18_s13 = sadd.s32 1, %s617_s13   ;;  %s775_s9 = smov %s605_s10 }
  0x80   : > { %p15_p3 = scmp.ge.s32.totalorder %s18_s13, 4   ;;  %s756_s10 = smov 0  }
  0x81   : > { %s776_s11 = smov %s613_s12  ;;  %s777_s12 = smov %s779_s15 }
  0x82   :  { %17 = sbr.rel (!%p15_p3) target bundleno = 6 (0x6), region = 93 }
  0x89   :  { %339 = vsyncpa [#allocation4], 1 }
  0x8a   :  { %341 = vsyncpa [#allocation4 + $0x1], 1 }
  0x8b   :  { %342 = vsyncpa [#allocation6], 1 }
  0x8c   :  { %344 = vsyncpa [#allocation6 + $0x1], 1 }

</bundles_post_ra>
